<compile_context>
chip_gen: v5e
topology: v5e:2x2
jax: 0.10.0
libtpu: 0.0.40
codegen_flags: <defaults>
</compile_context>

<pallas_src>
import jax
import jax.numpy as jnp
from jax.experimental import pallas as pl
from jax.experimental.pallas import tpu as pltpu


def _round_up(x, m):
    return (x + m - 1) // m * m


def _row_align(dtype):
    """Sublane packing for `dtype`: 8 rows for f32, 16 for bf16, 32 for int8."""
    itemsize = jnp.dtype(dtype).itemsize
    return 8 * max(1, 4 // itemsize)


# ---------------------------------------------------------------------------
# Kernel
# ---------------------------------------------------------------------------
def _make_mlp_kernel(s_dim, a_dim, S_SEC, H_PAD, A_PAD, row_align, compute_dtype):
    r2 = S_SEC + H_PAD          # start of W3 rows
    rb = S_SEC + 2 * H_PAD      # start of bias block

    def kernel(s_ref, p_ref, o_ref):
        f32 = jnp.float32
        x = s_ref[...]                                   # [TB, s_dim], no padding

        # Bias block: a single vreg, loaded once (tiny -> no spill pressure).
        bias = p_ref[rb:rb + row_align, :]
        b1 = bias[0:1, 0:H_PAD].astype(f32)
        b2 = bias[1:2, 0:H_PAD].astype(f32)
        b3 = bias[2:3, 0:A_PAD].astype(f32)

        # Layer 1 (weights read adjacent to their dot -> short live ranges).
        w1 = p_ref[0:s_dim, 0:H_PAD]                     # [s_dim, H_PAD]
        h = jnp.maximum(jnp.dot(x, w1, preferred_element_type=f32) + b1, 0.0)

        # Layer 2.
        w2 = p_ref[S_SEC:r2, 0:H_PAD]                    # [H_PAD, H_PAD]
        h = jnp.maximum(
            jnp.dot(h.astype(compute_dtype), w2, preferred_element_type=f32) + b2,
            0.0)

        # Layer 3 -> logits; store only the real a_dim lanes ([B, a_dim] output).
        w3 = p_ref[r2:rb, 0:A_PAD]                       # [H_PAD, A_PAD]
        out = jnp.dot(h.astype(compute_dtype), w3, preferred_element_type=f32) + b3
        o_ref[...] = out[:, 0:a_dim].astype(o_ref.dtype)

    return kernel


# ---------------------------------------------------------------------------
# Parameter packing (one pre-padded slab; f32 by default, bf16 optional)
# ---------------------------------------------------------------------------
def pack_params(params, dims, dtype=jnp.float32):
    """Pack (w1,b1,w2,b2,w3,b3) into one zero-padded [rows, width] slab."""
    w1, b1, w2, b2, w3, b3 = params
    s_dim, h_dim, a_dim = dims
    row_align = _row_align(dtype)
    S_SEC = _round_up(max(s_dim, 1), row_align)          # W1 row section
    H_PAD = _round_up(h_dim, 128)
    A_PAD = _round_up(a_dim, 128)
    width = max(H_PAD, A_PAD)
    rows = S_SEC + 2 * H_PAD + row_align                 # bias block at the end

    slab = jnp.zeros((rows, width), jnp.float32)
    slab = slab.at[0:s_dim, 0:h_dim].set(w1)
    slab = slab.at[S_SEC:S_SEC + h_dim, 0:h_dim].set(w2)
    slab = slab.at[S_SEC + H_PAD:S_SEC + H_PAD + h_dim, 0:a_dim].set(w3)
    rb = S_SEC + 2 * H_PAD
    slab = slab.at[rb + 0, 0:h_dim].set(b1)
    slab = slab.at[rb + 1, 0:h_dim].set(b2)
    slab = slab.at[rb + 2, 0:a_dim].set(b3)
    return slab.astype(dtype)


# ---------------------------------------------------------------------------
# Forward wrapper
# ---------------------------------------------------------------------------
def discrete_policy_forward(s, packed, dims, *, tb=1024):
    """s: [B, s_dim], packed: slab from pack_params -> logits [B, a_dim]."""
    s_dim, h_dim, a_dim = dims
    act_dtype = packed.dtype
    row_align = _row_align(act_dtype)
    S_SEC = _round_up(max(s_dim, 1), row_align)
    H_PAD = _round_up(h_dim, 128)
    A_PAD = _round_up(a_dim, 128)
    P_ROWS, P_COLS = packed.shape

    B = s.shape[0]
    # Batch tile: multiple of the sublane packing (8 f32 / 16 bf16), capped by `tb`
    # and so that the grid has >=2 blocks whenever B allows it (keeps both v7x
    # TensorCores busy; harmless extra ~0.35us grid step on v5e/v6e).
    TB = max(row_align,
             min(_round_up(tb, row_align),
                 _round_up(-(-B // 2), row_align)))
    n_blocks = pl.cdiv(B, TB)        # ragged edge block is masked by Pallas

    s_act = s.astype(act_dtype)
    kernel = _make_mlp_kernel(s_dim, a_dim, S_SEC, H_PAD, A_PAD,
                              row_align, act_dtype)

    # De-padded cost estimate (advisory scheduling hint only).
    itemsize = jnp.dtype(act_dtype).itemsize
    flops = 2 * B * (s_dim * h_dim + h_dim * h_dim + h_dim * a_dim)
    bytes_accessed = itemsize * (B * s_dim + packed.size + B * a_dim)

    def run(single_buffer_params):
        slab_kwargs = (
            {"pipeline_mode": pl.Buffered(1)} if single_buffer_params else {})
        return pl.pallas_call(
            kernel,
            out_shape=jax.ShapeDtypeStruct((B, a_dim), act_dtype),
            grid=(n_blocks,),
            in_specs=[
                # activation tile: streams / double-buffers over the batch grid
                pl.BlockSpec((TB, s_dim), lambda i: (i, 0)),
                # parameter slab: constant block index -> fetched once, VMEM-resident
                pl.BlockSpec((P_ROWS, P_COLS), lambda i: (0, 0), **slab_kwargs),
            ],
            out_specs=pl.BlockSpec((TB, a_dim), lambda i: (i, 0)),
            compiler_params=pltpu.CompilerParams(
                dimension_semantics=("parallel",)),
            cost_estimate=pl.CostEstimate(
                flops=flops, transcendentals=0, bytes_accessed=bytes_accessed),
        )(s_act, packed)

    try:
        return run(True)
    except Exception:
        # If this jax build rejects pl.Buffered(1) on the constant-index slab spec,
        # fall back to the default double-buffered spec (small VMEM delta only).
        return run(False)


# ---------------------------------------------------------------------------
# Init + reference
# ---------------------------------------------------------------------------
def init_params(key, s_dim, h_dim, a_dim):
    """PyTorch-Linear-style uniform init; weights stored [in, out] so y = x @ W + b."""
    ks = jax.random.split(key, 6)

    def lin(kw, kb, fan_in, fan_out):
        bound = 1.0 / jnp.sqrt(fan_in)
        w = jax.random.uniform(kw, (fan_in, fan_out), jnp.float32, -bound, bound)
        b = jax.random.uniform(kb, (fan_out,), jnp.float32, -bound, bound)
        return w, b

    w1, b1 = lin(ks[0], ks[1], s_dim, h_dim)
    w2, b2 = lin(ks[2], ks[3], h_dim, h_dim)
    w3, b3 = lin(ks[4], ks[5], h_dim, a_dim)
    return (w1, b1, w2, b2, w3, b3)


def _reference_forward(s, params):
    w1, b1, w2, b2, w3, b3 = params
    h1 = jnp.maximum(s @ w1 + b1, 0.0)
    h2 = jnp.maximum(h1 @ w2 + b2, 0.0)
    return h2 @ w3 + b3


if __name__ == "__main__":
    # cfg: s_dim=32, h_dim=64, a_dim=16
    s_dim, h_dim, a_dim = 32, 64, 16
    dims = (s_dim, h_dim, a_dim)

    key = jax.random.PRNGKey(0)
    k_params, k_in1, k_in2, k_in3 = jax.random.split(key, 4)
    params = init_params(k_params, s_dim, h_dim, a_dim)

    packed_f32 = pack_params(params, dims)               # f32 slab (default path)

    # Test 1: tiny batch -> single grid block.
    s_small = jax.random.normal(k_in1, (8, s_dim), jnp.float32)
    out_small = jax.block_until_ready(
        discrete_policy_forward(s_small, packed_f32, dims))
    ref_small = _reference_forward(s_small, params)
    assert out_small.shape == (8, a_dim)
    assert jnp.allclose(out_small, ref_small, atol=1e-5, rtol=1e-5), "mismatch (B=8)"

    # Test 2: ragged batch, default tile -> exactly 2 blocks (v7x dual-core) with a
    # masked edge block; output is emitted directly as [B, a_dim].
    s_big = jax.random.normal(k_in2, (200, s_dim), jnp.float32)
    out_big = jax.block_until_ready(
        discrete_policy_forward(s_big, packed_f32, dims))
    ref_big = _reference_forward(s_big, params)
    assert out_big.shape == (200, a_dim)
    assert jnp.allclose(out_big, ref_big, atol=1e-5, rtol=1e-5), "mismatch (B=200)"

    # Test 3: odd user-supplied tile (52 -> rounded to 56 internally), multi-block
    # grid with masked edge; exercises the TB-alignment correctness fix.
    out_odd = jax.block_until_ready(
        discrete_policy_forward(s_big, packed_f32, dims, tb=52))
    assert jnp.allclose(out_odd, ref_big, atol=1e-5, rtol=1e-5), "mismatch (tb=52)"

    # Test 4: optional bf16 activation/weight path (halves HBM bytes & MXU passes;
    # dots accumulate in f32, epilogue stays f32) -- looser tolerance by design.
    packed_bf16 = pack_params(params, dims, dtype=jnp.bfloat16)
    s_bf = jax.random.normal(k_in3, (256, s_dim), jnp.float32)
    out_bf = jax.block_until_ready(
        discrete_policy_forward(s_bf, packed_bf16, dims))
    ref_bf = _reference_forward(s_bf, params)
    assert out_bf.shape == (256, a_dim)
    assert out_bf.dtype == jnp.bfloat16
    assert jnp.allclose(out_bf.astype(jnp.float32), ref_bf, atol=5e-2, rtol=5e-2), \
        "mismatch (bf16 path)"

    print("KERNEL_OK")
</pallas_src>

<mosaic_0001>
module attributes {stable_mosaic.version = 11 : i64} {
  func.func @kernel(%arg0: i32, %arg1: memref<8x32xf32, #tpu.memory_space<vmem>>, %arg2: memref<296x128xf32, #tpu.memory_space<vmem>>, %arg3: memref<8x16xf32, #tpu.memory_space<vmem>>) attributes {dimension_semantics = [#tpu.dimension_semantics<parallel>], iteration_bounds = array<i64: 1>, scalar_prefetch = 0 : i64, scratch_operands = 0 : i64, tpu.core_type = #tpu.core_type<tc>, window_params = [{transform_indices = @transform_0, window_bounds = array<i64: 8, 32>}, {pipeline_mode = #tpu.pipeline_mode<synchronous>, transform_indices = @transform_1, window_bounds = array<i64: 296, 128>}, {transform_indices = @transform_2, window_bounds = array<i64: 8, 16>}]} {
    %c0 = arith.constant 0 : index
    %c0_0 = arith.constant 0 : index
    %0 = vector.load %arg1[%c0, %c0_0] : memref<8x32xf32, #tpu.memory_space<vmem>>, vector<8x32xf32>
    %c288 = arith.constant 288 : index
    %c0_1 = arith.constant 0 : index
    %1 = vector.load %arg2[%c288, %c0_1] : memref<296x128xf32, #tpu.memory_space<vmem>>, vector<8x128xf32>
    %2 = vector.extract_strided_slice %1 {offsets = [0, 0], sizes = [1, 128], strides = [1, 1]} : vector<8x128xf32> to vector<1x128xf32>
    %3 = vector.extract_strided_slice %1 {offsets = [1, 0], sizes = [1, 128], strides = [1, 1]} : vector<8x128xf32> to vector<1x128xf32>
    %4 = vector.extract_strided_slice %1 {offsets = [2, 0], sizes = [1, 128], strides = [1, 1]} : vector<8x128xf32> to vector<1x128xf32>
    %c0_2 = arith.constant 0 : index
    %c0_3 = arith.constant 0 : index
    %5 = vector.load %arg2[%c0_2, %c0_3] : memref<296x128xf32, #tpu.memory_space<vmem>>, vector<32x128xf32>
    %cst = arith.constant dense<0.000000e+00> : vector<8x128xf32>
    %6 = tpu.matmul %0, %5, %cst {dimension_numbers = #tpu.dot_dimension_numbers<[1], [0], [0], [1], [0, 0, 1, 1], [], []>} : vector<8x32xf32>, vector<32x128xf32>, vector<8x128xf32> -> vector<8x128xf32>
    %7 = vector.broadcast %2 : vector<1x128xf32> to vector<8x128xf32>
    %8 = arith.addf %6, %7 : vector<8x128xf32>
    %cst_4 = arith.constant 0.000000e+00 : f32
    %9 = vector.broadcast %cst_4 : f32 to vector<8x128xf32>
    %10 = arith.maximumf %8, %9 : vector<8x128xf32>
    %c32 = arith.constant 32 : index
    %c0_5 = arith.constant 0 : index
    %11 = vector.load %arg2[%c32, %c0_5] : memref<296x128xf32, #tpu.memory_space<vmem>>, vector<128x128xf32>
    %cst_6 = arith.constant dense<0.000000e+00> : vector<8x128xf32>
    %12 = tpu.matmul %10, %11, %cst_6 {dimension_numbers = #tpu.dot_dimension_numbers<[1], [0], [0], [1], [0, 0, 1, 1], [], []>} : vector<8x128xf32>, vector<128x128xf32>, vector<8x128xf32> -> vector<8x128xf32>
    %13 = vector.broadcast %3 : vector<1x128xf32> to vector<8x128xf32>
    %14 = arith.addf %12, %13 : vector<8x128xf32>
    %cst_7 = arith.constant 0.000000e+00 : f32
    %15 = vector.broadcast %cst_7 : f32 to vector<8x128xf32>
    %16 = arith.maximumf %14, %15 : vector<8x128xf32>
    %c160 = arith.constant 160 : index
    %c0_8 = arith.constant 0 : index
    %17 = vector.load %arg2[%c160, %c0_8] : memref<296x128xf32, #tpu.memory_space<vmem>>, vector<128x128xf32>
    %cst_9 = arith.constant dense<0.000000e+00> : vector<8x128xf32>
    %18 = tpu.matmul %16, %17, %cst_9 {dimension_numbers = #tpu.dot_dimension_numbers<[1], [0], [0], [1], [0, 0, 1, 1], [], []>} : vector<8x128xf32>, vector<128x128xf32>, vector<8x128xf32> -> vector<8x128xf32>
    %19 = vector.broadcast %4 : vector<1x128xf32> to vector<8x128xf32>
    %20 = arith.addf %18, %19 : vector<8x128xf32>
    %21 = vector.extract_strided_slice %20 {offsets = [0, 0], sizes = [8, 16], strides = [1, 1]} : vector<8x128xf32> to vector<8x16xf32>
    %c0_10 = arith.constant 0 : index
    %c0_11 = arith.constant 0 : index
    %22 = vector.load %arg3[%c0_10, %c0_11] : memref<8x16xf32, #tpu.memory_space<vmem>>, vector<8x16xf32>
    tpu.vector_store %arg3[%c0_10, %c0_11], %21 {strides = array<i32>} : memref<8x16xf32, #tpu.memory_space<vmem>>, vector<8x16xf32>,
    return
  }
  func.func @transform_0(%arg0: i32) -> (i32, i32) {
    %c0_i32 = arith.constant 0 : i32
    %c0_i32_0 = arith.constant 0 : i32
    return %arg0, %c0_i32 : i32, i32
  }
  func.func @transform_1(%arg0: i32) -> (i32, i32) {
    %c0_i32 = arith.constant 0 : i32
    %c0_i32_0 = arith.constant 0 : i32
    %c0_i32_1 = arith.constant 0 : i32
    return %c0_i32, %c0_i32_0 : i32, i32
  }
  func.func @transform_2(%arg0: i32) -> (i32, i32) {
    %c0_i32 = arith.constant 0 : i32
    %c0_i32_0 = arith.constant 0 : i32
    return %arg0, %c0_i32 : i32, i32
  }
}

module attributes {stable_mosaic.version = 11 : i64} {
  func.func @kernel(%arg0: i32, %arg1: memref<8x32xf32, #tpu.memory_space<vmem>>, %arg2: memref<296x128xf32, #tpu.memory_space<vmem>>, %arg3: memref<8x16xf32, #tpu.memory_space<vmem>>) attributes {dimension_semantics = [#tpu.dimension_semantics<parallel>], iteration_bounds = array<i64: 1>, scalar_prefetch = 0 : i64, scratch_operands = 0 : i64, tpu.core_type = #tpu.core_type<tc>, window_params = [{transform_indices = @transform_0, window_bounds = array<i64: 8, 32>}, {pipeline_mode = #tpu.pipeline_mode<synchronous>, transform_indices = @transform_1, window_bounds = array<i64: 296, 128>}, {transform_indices = @transform_2, window_bounds = array<i64: 8, 16>}]} {
    %c0 = arith.constant 0 : index
    %c0_0 = arith.constant 0 : index
    %0 = vector.load %arg1[%c0, %c0_0] : memref<8x32xf32, #tpu.memory_space<vmem>>, vector<8x32xf32>
    %c288 = arith.constant 288 : index
    %c0_1 = arith.constant 0 : index
    %1 = vector.load %arg2[%c288, %c0_1] : memref<296x128xf32, #tpu.memory_space<vmem>>, vector<8x128xf32>
    %2 = vector.extract_strided_slice %1 {offsets = [0, 0], sizes = [1, 128], strides = [1, 1]} : vector<8x128xf32> to vector<1x128xf32>
    %3 = vector.extract_strided_slice %1 {offsets = [1, 0], sizes = [1, 128], strides = [1, 1]} : vector<8x128xf32> to vector<1x128xf32>
    %4 = vector.extract_strided_slice %1 {offsets = [2, 0], sizes = [1, 128], strides = [1, 1]} : vector<8x128xf32> to vector<1x128xf32>
    %c0_2 = arith.constant 0 : index
    %c0_3 = arith.constant 0 : index
    %5 = vector.load %arg2[%c0_2, %c0_3] : memref<296x128xf32, #tpu.memory_space<vmem>>, vector<32x128xf32>
    %cst = arith.constant dense<0.000000e+00> : vector<8x128xf32>
    %6 = tpu.matmul %0, %5, %cst {dimension_numbers = #tpu.dot_dimension_numbers<[1], [0], [0], [1], [0, 0, 1, 1], [], []>} : vector<8x32xf32>, vector<32x128xf32>, vector<8x128xf32> -> vector<8x128xf32>
    %7 = vector.broadcast %2 : vector<1x128xf32> to vector<8x128xf32>
    %8 = arith.addf %6, %7 : vector<8x128xf32>
    %cst_4 = arith.constant 0.000000e+00 : f32
    %9 = vector.broadcast %cst_4 : f32 to vector<8x128xf32>
    %10 = arith.maximumf %8, %9 : vector<8x128xf32>
    %c32 = arith.constant 32 : index
    %c0_5 = arith.constant 0 : index
    %11 = vector.load %arg2[%c32, %c0_5] : memref<296x128xf32, #tpu.memory_space<vmem>>, vector<128x128xf32>
    %cst_6 = arith.constant dense<0.000000e+00> : vector<8x128xf32>
    %12 = tpu.matmul %10, %11, %cst_6 {dimension_numbers = #tpu.dot_dimension_numbers<[1], [0], [0], [1], [0, 0, 1, 1], [], []>} : vector<8x128xf32>, vector<128x128xf32>, vector<8x128xf32> -> vector<8x128xf32>
    %13 = vector.broadcast %3 : vector<1x128xf32> to vector<8x128xf32>
    %14 = arith.addf %12, %13 : vector<8x128xf32>
    %cst_7 = arith.constant 0.000000e+00 : f32
    %15 = vector.broadcast %cst_7 : f32 to vector<8x128xf32>
    %16 = arith.maximumf %14, %15 : vector<8x128xf32>
    %c160 = arith.constant 160 : index
    %c0_8 = arith.constant 0 : index
    %17 = vector.load %arg2[%c160, %c0_8] : memref<296x128xf32, #tpu.memory_space<vmem>>, vector<128x128xf32>
    %cst_9 = arith.constant dense<0.000000e+00> : vector<8x128xf32>
    %18 = tpu.matmul %16, %17, %cst_9 {dimension_numbers = #tpu.dot_dimension_numbers<[1], [0], [0], [1], [0, 0, 1, 1], [], []>} : vector<8x128xf32>, vector<128x128xf32>, vector<8x128xf32> -> vector<8x128xf32>
    %19 = vector.broadcast %4 : vector<1x128xf32> to vector<8x128xf32>
    %20 = arith.addf %18, %19 : vector<8x128xf32>
    %21 = vector.extract_strided_slice %20 {offsets = [0, 0], sizes = [8, 16], strides = [1, 1]} : vector<8x128xf32> to vector<8x16xf32>
    %c0_10 = arith.constant 0 : index
    %c0_11 = arith.constant 0 : index
    %22 = vector.load %arg3[%c0_10, %c0_11] : memref<8x16xf32, #tpu.memory_space<vmem>>, vector<8x16xf32>
    tpu.vector_store %arg3[%c0_10, %c0_11], %21 {strides = array<i32>} : memref<8x16xf32, #tpu.memory_space<vmem>>, vector<8x16xf32>,
    return
  }
  func.func @transform_0(%arg0: i32) -> (i32, i32) {
    %c0_i32 = arith.constant 0 : i32
    %c0_i32_0 = arith.constant 0 : i32
    return %arg0, %c0_i32 : i32, i32
  }
  func.func @transform_1(%arg0: i32) -> (i32, i32) {
    %c0_i32 = arith.constant 0 : i32
    %c0_i32_0 = arith.constant 0 : i32
    %c0_i32_1 = arith.constant 0 : i32
    return %c0_i32, %c0_i32_0 : i32, i32
  }
  func.func @transform_2(%arg0: i32) -> (i32, i32) {
    %c0_i32 = arith.constant 0 : i32
    %c0_i32_0 = arith.constant 0 : i32
    return %arg0, %c0_i32 : i32, i32
  }
}

</mosaic_0001>

<bundles_post_ra>
// kernel: tpu_custom_call.1
= control target key start
LH: loop header
LB: loop body
LE: loop exit
PB: predicated region body
PF: predicated region fallthrough
CT: control target
= control target key end

     0   :  { %7 = vsyncpa [#allocation3], 0  ;;  %s282_s0 = inlined_call_operand.hbm [shape: f32[8,32], index: 0, kind: input, shape index: {}]   ;;  %s283_s1 = inlined_call_operand.hbm [shape: f32[296,128], index: 1, kind: input, shape index: {}]   ;;  %s284_s2 = inlined_call_operand.hbm [shape: f32[8,16], index: 2, kind: output, shape index: {}]  }
   0x1   :  { %8 = vsyncpa [#allocation6], 0 }
   0x2   :  { %9 = vsyncpa [#allocation4], 0  ;;  %s15_s11 = sshll.u32 %s282_s0, 4  ;;  %s253_s12 = smov [#allocation2]   ;;  %s16_s11 = int_to_ptr.hbm [resolvable:$true] %s15_s11 }
   0x3   :  { %s17_s13 = sshll.u32 %s253_s12, 4  ;;  %s25_s16 = sshll.u32 %s283_s1, 4  ;;  %s18_s13 = int_to_ptr.vmem [resolvable:$true] %s17_s13  ;;  %s26_s16 = int_to_ptr.hbm [resolvable:$true] %s25_s16 }
   0x4   :  { %20 = dma.hbm_to_vmem [thread:$0]  %s16_s11, 128, %s18_s13, [#allocation3]  }
   0x5   :  { %s254_s17 = smov [#allocation5]   ;;  %s255_s19 = smov 128  }
   0x6   :  { %s27_s18 = sshll.u32 %s254_s17, 4  ;;  %s256_s20 = smov 8   ;;  %s28_s18 = int_to_ptr.vmem [resolvable:$true] %s27_s18 }
   0x7   :  { %33 = dma.hbm_to_vmem [thread:$0]  %s26_s16, 4736, %s28_s18, [#allocation6], %s255_s19, %s255_s19, %s256_s20  }
   0x8   :  { %247 = dma.done.wait [#allocation3], 128  }
   0x9   :  { %248 = vsyncadd [#allocation3], 4294967168 }
   0xa   :  { %249 = dma.done.wait [#allocation6], 4736  }
   0xb   :  { %250 = vsyncadd [#allocation6], 4294962560  ;;  %v47_v0 = vld [vmem:[#allocation5 + $0x18] sm:$0xff]  ;;  %v46_v1 = vld [vmem:[#allocation5 + $0x10] sm:$0xff]  ;;  %vm49_vm0 = vcmask 261120   ;;  %s257_s0 = smov [#allocation7]  }
   0xc   :  { %65 = vmatpush.msra.mxu0 %v47_v0  ;;  %v89_v2 = vld [vmem:[#allocation5 + $0x98] sm:$0xff]  ;;  %v45_v3 = vld [vmem:[#allocation5 + $0x8] sm:$0xff]  ;;  %v88_v4 = vld [vmem:[#allocation5 + $0x90] sm:$0xff]  ;;  %s156_s1 = sshll.u32 %s257_s0, 4  ;;  %s158_s23 = sshll.u32 %s284_s2, 4  ;;  %vm149_vm1 = vcmask 130048   ;;  %s157_s1 = int_to_ptr.vmem [resolvable:$true] %s156_s1  ;;  %s159_s23 = int_to_ptr.hbm [resolvable:$true] %s158_s23 }
   0xd   :  { %91 = vmatpush.msra.mxu1 %v89_v2  ;;  %v87_v5 = vld [vmem:[#allocation5 + $0x88] sm:$0xff]  ;;  %v44_v6 = vld [vmem:[#allocation5] sm:$0xff]  ;;  %v42_v7 = vld [vmem:[#allocation2] sm:$0xff] }
   0xe   :  { %66 = vmatpush.msra.mxu0 %v46_v1  ;;  %v86_v8 = vld [vmem:[#allocation5 + $0x80] sm:$0xff]  ;;  %v85_v9 = vld [vmem:[#allocation5 + $0x78] sm:$0xff]  ;;  %v84_v10 = vld [vmem:[#allocation5 + $0x70] sm:$0xff] }
   0xf   :  { %92 = vmatpush.msra.mxu1 %v88_v4  ;;  %v83_v11 = vld [vmem:[#allocation5 + $0x68] sm:$0xff]  ;;  %v82_v12 = vld [vmem:[#allocation5 + $0x60] sm:$0xff]  ;;  %v81_v13 = vld [vmem:[#allocation5 + $0x58] sm:$0xff] }
  0x10   :  { %67 = vmatpush.msra.mxu0 %v45_v3  ;;  %v80_v14 = vld [vmem:[#allocation5 + $0x50] sm:$0xff]  ;;  %v79_v15 = vld [vmem:[#allocation5 + $0x48] sm:$0xff]  ;;  %v78_v16 = vld [vmem:[#allocation5 + $0x40] sm:$0xff] }
  0x11   :  { %93 = vmatpush.msra.mxu1 %v87_v5  ;;  %v77_v17 = vld [vmem:[#allocation5 + $0x38] sm:$0xff]  ;;  %v76_v18 = vld [vmem:[#allocation5 + $0x30] sm:$0xff]  ;;  %v75_v19 = vld [vmem:[#allocation5 + $0x28] sm:$0xff] }
  0x12   :  { %68 = vmatpush.msra.mxu0 %v44_v6  ;;  %v74_v20 = vld [vmem:[#allocation5 + $0x20] sm:$0xff]  ;;  %v127_v21 = vld [vmem:[#allocation5 + $0x118] sm:$0xff]  ;;  %v126_v22 = vld [vmem:[#allocation5 + $0x110] sm:$0xff] }
  0x13   :  { %169 = vmatmul.msk.f32.vlgmr.msra.gmra.mxu0 %vm49_vm0, %v42_v7  ;;  %94 = vmatpush.msra.mxu1 %v86_v8  ;;  %v125_v23 = vld [vmem:[#allocation5 + $0x108] sm:$0xff]  ;;  %v124_v24 = vld [vmem:[#allocation5 + $0x100] sm:$0xff]  ;;  %v123_v25 = vld [vmem:[#allocation5 + $0xf8] sm:$0xff] }
  0x14   :  { %129 = vmatpush.msra.mxu2 %v127_v21  ;;  %v122_v26 = vld [vmem:[#allocation5 + $0xf0] sm:$0xff]  ;;  %v121_v27 = vld [vmem:[#allocation5 + $0xe8] sm:$0xff]  ;;  %v120_v28 = vld [vmem:[#allocation5 + $0xe0] sm:$0xff] }
  0x15   :  { %95 = vmatpush.msra.mxu1 %v85_v9  ;;  %v119_v29 = vld [vmem:[#allocation5 + $0xd8] sm:$0xff]  ;;  %v118_v30 = vld [vmem:[#allocation5 + $0xd0] sm:$0xff]  ;;  %v117_v31 = vld [vmem:[#allocation5 + $0xc8] sm:$0xff] }
  0x16   :  { %130 = vmatpush.msra.mxu2 %v126_v22  ;;  %v116_v32 = vld [vmem:[#allocation5 + $0xc0] sm:$0xff]  ;;  %v115_v34 = vld [vmem:[#allocation5 + $0xb8] sm:$0xff]  ;;  %v114_v39 = vld [vmem:[#allocation5 + $0xb0] sm:$0xff] }
  0x17   :  { %96 = vmatpush.msra.mxu1 %v84_v10  ;;  %v43_v33 = vld [vmem:[#allocation5 + $0x120] sm:$0xff]  ;;  %v113_v40 = vld [vmem:[#allocation5 + $0xa8] sm:$0xff] }
  0x18   :  { %131 = vmatpush.msra.mxu2 %v125_v23  ;;  %v48_v35 = vperm.slane %v43_v33, 0  ;;  %v112_v41 = vld [vmem:[#allocation5 + $0xa0] sm:$0xff]  ;;  %v90_v42 = vperm.slane %v43_v33, 1  ;;  %v128_v46 = vperm.slane %v43_v33, 2 }
  0x19   :  { %97 = vmatpush.msra.mxu1 %v83_v11 }
  0x1a   :  { %132 = vmatpush.msra.mxu2 %v124_v24 }
  0x1b   :  { %98 = vmatpush.msra.mxu1 %v82_v12 }
  0x1c   :  { %133 = vmatpush.msra.mxu2 %v123_v25 }
  0x1d   :  { %99 = vmatpush.msra.mxu1 %v81_v13 }
  0x1e   :  { %134 = vmatpush.msra.mxu2 %v122_v26 }
  0x1f   :  { %100 = vmatpush.msra.mxu1 %v80_v14 }
  0x20   :  { %135 = vmatpush.msra.mxu2 %v121_v27 }
  0x21   :  { %101 = vmatpush.msra.mxu1 %v79_v15 }
  0x22   :  { %136 = vmatpush.msra.mxu2 %v120_v28 }
  0x23   :  { %102 = vmatpush.msra.mxu1 %v78_v16 }
  0x24   :  { %137 = vmatpush.msra.mxu2 %v119_v29 }
  0x25   :  { %103 = vmatpush.msra.mxu1 %v77_v17 }
  0x26   :  { %138 = vmatpush.msra.mxu2 %v118_v30 }
  0x27   :  { %104 = vmatpush.msra.mxu1 %v76_v18 }
  0x28   :  { %139 = vmatpush.msra.mxu2 %v117_v31 }
  0x29   :  { %105 = vmatpush.msra.mxu1 %v75_v19 }
  0x2a   :  { %140 = vmatpush.msra.mxu2 %v116_v32 }
  0x2b   :  { %106 = vmatpush.msra.mxu1 %v74_v20 }
  0x2c   :  { %141 = vmatpush.msra.mxu2 %v115_v34 }
  0x2e   :  { %142 = vmatpush.msra.mxu2 %v114_v39 }
  0x30   :  { %143 = vmatpush.msra.mxu2 %v113_v40 }
  0x32   :  { %144 = vmatpush.msra.mxu2 %v112_v41 }
  0x90   :  { %v70_v36 = vpop.f32.mrf.mxu0 }
  0x91   :  { %v71_v37 = vadd.f32 %v70_v36, %v48_v35 }
  0x93   :  { %v73_v38 = vmax.f32 %v71_v37, 0.0 }
  0x95   :  { %107 = vmatmul.f32.vlgmr.msra.gmra.mxu1 %v73_v38 }
 0x112   :  { %v108_v43 = vpop.f32.mrf.mxu1 }
 0x113   :  { %v109_v44 = vadd.f32 %v108_v43, %v90_v42 }
 0x115   :  { %v111_v45 = vmax.f32 %v109_v44, 0.0 }
 0x117   :  { %145 = vmatmul.f32.vlgmr.msra.gmra.mxu2 %v111_v45 }
 0x19a   :  { %v146_v47 = vpop.f32.mrf.mxu2 }
 0x19b   :  { %v147_v48 = vadd.f32 %v146_v47, %v128_v46 }
 0x19d   :  { %150 = vst.msk [vmem:[#allocation7] sm:$0xff] %vm149_vm1, %v147_v48 }
 0x19e   :  { %161 = dma.vmem_to_hbm [thread:$0]  %s157_s1, 128, %s159_s23, [#allocation4]  }
 0x19f   :  { %251 = dma.done.wait [#allocation4], 128  }
 0x1a0   :  { %252 = vsyncadd [#allocation4], 4294967168 }
 0x1a1   :  { %166 = vsyncpa [#allocation3], 1 }
 0x1a2   :  { %167 = vsyncpa [#allocation6], 1 }
 0x1a3   :  { %168 = vsyncpa [#allocation4], 1 }

// kernel: tpu_custom_call.1
= control target key start
LH: loop header
LB: loop body
LE: loop exit
PB: predicated region body
PF: predicated region fallthrough
CT: control target
= control target key end

     0   :  { %7 = vsyncpa [#allocation3], 0  ;;  %s282_s0 = inlined_call_operand.hbm [shape: f32[8,32], index: 0, kind: input, shape index: {}]   ;;  %s283_s1 = inlined_call_operand.hbm [shape: f32[296,128], index: 1, kind: input, shape index: {}]   ;;  %s284_s2 = inlined_call_operand.hbm [shape: f32[8,16], index: 2, kind: output, shape index: {}]  }
   0x1   :  { %8 = vsyncpa [#allocation6], 0 }
   0x2   :  { %9 = vsyncpa [#allocation4], 0  ;;  %s15_s11 = sshll.u32 %s282_s0, 4  ;;  %s253_s12 = smov [#allocation2]   ;;  %s16_s11 = int_to_ptr.hbm [resolvable:$true] %s15_s11 }
   0x3   :  { %s17_s13 = sshll.u32 %s253_s12, 4  ;;  %s25_s16 = sshll.u32 %s283_s1, 4  ;;  %s18_s13 = int_to_ptr.vmem [resolvable:$true] %s17_s13  ;;  %s26_s16 = int_to_ptr.hbm [resolvable:$true] %s25_s16 }
   0x4   :  { %20 = dma.hbm_to_vmem [thread:$0]  %s16_s11, 128, %s18_s13, [#allocation3]  }
   0x5   :  { %s254_s17 = smov [#allocation5]   ;;  %s255_s19 = smov 128  }
   0x6   :  { %s27_s18 = sshll.u32 %s254_s17, 4  ;;  %s256_s20 = smov 8   ;;  %s28_s18 = int_to_ptr.vmem [resolvable:$true] %s27_s18 }
   0x7   :  { %33 = dma.hbm_to_vmem [thread:$0]  %s26_s16, 4736, %s28_s18, [#allocation6], %s255_s19, %s255_s19, %s256_s20  }
   0x8   :  { %247 = dma.done.wait [#allocation3], 128  }
   0x9   :  { %248 = vsyncadd [#allocation3], 4294967168 }
   0xa   :  { %249 = dma.done.wait [#allocation6], 4736  }
   0xb   :  { %250 = vsyncadd [#allocation6], 4294962560  ;;  %v47_v0 = vld [vmem:[#allocation5 + $0x18] sm:$0xff]  ;;  %v46_v1 = vld [vmem:[#allocation5 + $0x10] sm:$0xff]  ;;  %vm49_vm0 = vcmask 261120   ;;  %s257_s0 = smov [#allocation7]  }
   0xc   :  { %65 = vmatpush.msra.mxu0 %v47_v0  ;;  %v89_v2 = vld [vmem:[#allocation5 + $0x98] sm:$0xff]  ;;  %v45_v3 = vld [vmem:[#allocation5 + $0x8] sm:$0xff]  ;;  %v88_v4 = vld [vmem:[#allocation5 + $0x90] sm:$0xff]  ;;  %s156_s1 = sshll.u32 %s257_s0, 4  ;;  %s158_s23 = sshll.u32 %s284_s2, 4  ;;  %vm149_vm1 = vcmask 130048   ;;  %s157_s1 = int_to_ptr.vmem [resolvable:$true] %s156_s1  ;;  %s159_s23 = int_to_ptr.hbm [resolvable:$true] %s158_s23 }
   0xd   :  { %91 = vmatpush.msra.mxu1 %v89_v2  ;;  %v87_v5 = vld [vmem:[#allocation5 + $0x88] sm:$0xff]  ;;  %v44_v6 = vld [vmem:[#allocation5] sm:$0xff]  ;;  %v42_v7 = vld [vmem:[#allocation2] sm:$0xff] }
   0xe   :  { %66 = vmatpush.msra.mxu0 %v46_v1  ;;  %v86_v8 = vld [vmem:[#allocation5 + $0x80] sm:$0xff]  ;;  %v85_v9 = vld [vmem:[#allocation5 + $0x78] sm:$0xff]  ;;  %v84_v10 = vld [vmem:[#allocation5 + $0x70] sm:$0xff] }
   0xf   :  { %92 = vmatpush.msra.mxu1 %v88_v4  ;;  %v83_v11 = vld [vmem:[#allocation5 + $0x68] sm:$0xff]  ;;  %v82_v12 = vld [vmem:[#allocation5 + $0x60] sm:$0xff]  ;;  %v81_v13 = vld [vmem:[#allocation5 + $0x58] sm:$0xff] }
  0x10   :  { %67 = vmatpush.msra.mxu0 %v45_v3  ;;  %v80_v14 = vld [vmem:[#allocation5 + $0x50] sm:$0xff]  ;;  %v79_v15 = vld [vmem:[#allocation5 + $0x48] sm:$0xff]  ;;  %v78_v16 = vld [vmem:[#allocation5 + $0x40] sm:$0xff] }
  0x11   :  { %93 = vmatpush.msra.mxu1 %v87_v5  ;;  %v77_v17 = vld [vmem:[#allocation5 + $0x38] sm:$0xff]  ;;  %v76_v18 = vld [vmem:[#allocation5 + $0x30] sm:$0xff]  ;;  %v75_v19 = vld [vmem:[#allocation5 + $0x28] sm:$0xff] }
  0x12   :  { %68 = vmatpush.msra.mxu0 %v44_v6  ;;  %v74_v20 = vld [vmem:[#allocation5 + $0x20] sm:$0xff]  ;;  %v127_v21 = vld [vmem:[#allocation5 + $0x118] sm:$0xff]  ;;  %v126_v22 = vld [vmem:[#allocation5 + $0x110] sm:$0xff] }
  0x13   :  { %169 = vmatmul.msk.f32.vlgmr.msra.gmra.mxu0 %vm49_vm0, %v42_v7  ;;  %94 = vmatpush.msra.mxu1 %v86_v8  ;;  %v125_v23 = vld [vmem:[#allocation5 + $0x108] sm:$0xff]  ;;  %v124_v24 = vld [vmem:[#allocation5 + $0x100] sm:$0xff]  ;;  %v123_v25 = vld [vmem:[#allocation5 + $0xf8] sm:$0xff] }
  0x14   :  { %129 = vmatpush.msra.mxu2 %v127_v21  ;;  %v122_v26 = vld [vmem:[#allocation5 + $0xf0] sm:$0xff]  ;;  %v121_v27 = vld [vmem:[#allocation5 + $0xe8] sm:$0xff]  ;;  %v120_v28 = vld [vmem:[#allocation5 + $0xe0] sm:$0xff] }
  0x15   :  { %95 = vmatpush.msra.mxu1 %v85_v9  ;;  %v119_v29 = vld [vmem:[#allocation5 + $0xd8] sm:$0xff]  ;;  %v118_v30 = vld [vmem:[#allocation5 + $0xd0] sm:$0xff]  ;;  %v117_v31 = vld [vmem:[#allocation5 + $0xc8] sm:$0xff] }
  0x16   :  { %130 = vmatpush.msra.mxu2 %v126_v22  ;;  %v116_v32 = vld [vmem:[#allocation5 + $0xc0] sm:$0xff]  ;;  %v115_v34 = vld [vmem:[#allocation5 + $0xb8] sm:$0xff]  ;;  %v114_v39 = vld [vmem:[#allocation5 + $0xb0] sm:$0xff] }
  0x17   :  { %96 = vmatpush.msra.mxu1 %v84_v10  ;;  %v43_v33 = vld [vmem:[#allocation5 + $0x120] sm:$0xff]  ;;  %v113_v40 = vld [vmem:[#allocation5 + $0xa8] sm:$0xff] }
  0x18   :  { %131 = vmatpush.msra.mxu2 %v125_v23  ;;  %v48_v35 = vperm.slane %v43_v33, 0  ;;  %v112_v41 = vld [vmem:[#allocation5 + $0xa0] sm:$0xff]  ;;  %v90_v42 = vperm.slane %v43_v33, 1  ;;  %v128_v46 = vperm.slane %v43_v33, 2 }
  0x19   :  { %97 = vmatpush.msra.mxu1 %v83_v11 }
  0x1a   :  { %132 = vmatpush.msra.mxu2 %v124_v24 }
  0x1b   :  { %98 = vmatpush.msra.mxu1 %v82_v12 }
  0x1c   :  { %133 = vmatpush.msra.mxu2 %v123_v25 }
  0x1d   :  { %99 = vmatpush.msra.mxu1 %v81_v13 }
  0x1e   :  { %134 = vmatpush.msra.mxu2 %v122_v26 }
  0x1f   :  { %100 = vmatpush.msra.mxu1 %v80_v14 }
  0x20   :  { %135 = vmatpush.msra.mxu2 %v121_v27 }
  0x21   :  { %101 = vmatpush.msra.mxu1 %v79_v15 }
  0x22   :  { %136 = vmatpush.msra.mxu2 %v120_v28 }
  0x23   :  { %102 = vmatpush.msra.mxu1 %v78_v16 }
  0x24   :  { %137 = vmatpush.msra.mxu2 %v119_v29 }
  0x25   :  { %103 = vmatpush.msra.mxu1 %v77_v17 }
  0x26   :  { %138 = vmatpush.msra.mxu2 %v118_v30 }
  0x27   :  { %104 = vmatpush.msra.mxu1 %v76_v18 }
  0x28   :  { %139 = vmatpush.msra.mxu2 %v117_v31 }
  0x29   :  { %105 = vmatpush.msra.mxu1 %v75_v19 }
  0x2a   :  { %140 = vmatpush.msra.mxu2 %v116_v32 }
  0x2b   :  { %106 = vmatpush.msra.mxu1 %v74_v20 }
  0x2c   :  { %141 = vmatpush.msra.mxu2 %v115_v34 }
  0x2e   :  { %142 = vmatpush.msra.mxu2 %v114_v39 }
  0x30   :  { %143 = vmatpush.msra.mxu2 %v113_v40 }
  0x32   :  { %144 = vmatpush.msra.mxu2 %v112_v41 }
  0x90   :  { %v70_v36 = vpop.f32.mrf.mxu0 }
  0x91   :  { %v71_v37 = vadd.f32 %v70_v36, %v48_v35 }
  0x93   :  { %v73_v38 = vmax.f32 %v71_v37, 0.0 }
  0x95   :  { %107 = vmatmul.f32.vlgmr.msra.gmra.mxu1 %v73_v38 }
 0x112   :  { %v108_v43 = vpop.f32.mrf.mxu1 }
 0x113   :  { %v109_v44 = vadd.f32 %v108_v43, %v90_v42 }
 0x115   :  { %v111_v45 = vmax.f32 %v109_v44, 0.0 }
 0x117   :  { %145 = vmatmul.f32.vlgmr.msra.gmra.mxu2 %v111_v45 }
 0x19a   :  { %v146_v47 = vpop.f32.mrf.mxu2 }
 0x19b   :  { %v147_v48 = vadd.f32 %v146_v47, %v128_v46 }
 0x19d   :  { %150 = vst.msk [vmem:[#allocation7] sm:$0xff] %vm149_vm1, %v147_v48 }
 0x19e   :  { %161 = dma.vmem_to_hbm [thread:$0]  %s157_s1, 128, %s159_s23, [#allocation4]  }
 0x19f   :  { %251 = dma.done.wait [#allocation4], 128  }
 0x1a0   :  { %252 = vsyncadd [#allocation4], 4294967168 }
 0x1a1   :  { %166 = vsyncpa [#allocation3], 1 }
 0x1a2   :  { %167 = vsyncpa [#allocation6], 1 }
 0x1a3   :  { %168 = vsyncpa [#allocation4], 1 }

</bundles_post_ra>
